<compile_context>
chip_gen: v7x
topology: tpu7x:2x2x1
jax: 0.10.0
libtpu: 0.0.40
codegen_flags: <defaults>
</compile_context>

<pallas_src>
import math

import jax
import jax.numpy as jnp
from jax.experimental import pallas as pl
from jax.experimental.pallas import tpu as pltpu


def _interp_matrix(l_in: int, l_out: int, scale: float) -> jnp.ndarray:
    """(L_in, L_out) linear-interpolation matrix, align_corners=False."""
    j = jnp.arange(l_out, dtype=jnp.float32)
    src = (j + 0.5) / float(scale) - 0.5          # PyTorch source-index formula
    src = jnp.maximum(src, 0.0)                   # clamp negative coords to 0
    i0 = jnp.clip(jnp.floor(src).astype(jnp.int32), 0, l_in - 1)
    i1 = jnp.minimum(i0 + 1, l_in - 1)
    w1 = src - i0.astype(jnp.float32)
    w0 = 1.0 - w1
    cols = jnp.arange(l_out, dtype=jnp.int32)
    w = jnp.zeros((l_in, l_out), jnp.float32)
    w = w.at[i0, cols].add(w0)
    w = w.at[i1, cols].add(w1)                    # i0 == i1 at the right edge -> sums to 1
    return w


def _interp_kernel(x_ref, w_ref, o_ref):
    # x_ref: (TM, L_in) VMEM   w_ref: (L_in, L_out) VMEM   o_ref: (TM, L_out) VMEM
    o_ref[...] = jnp.dot(
        x_ref[...].astype(jnp.float32), w_ref[...],
        preferred_element_type=jnp.float32,
    ).astype(o_ref.dtype)


def linear_interpolate(x, scale):
    """F.interpolate(x, scale_factor=scale, mode='linear') for x of shape (N, C, L)."""
    n, c, l_in = x.shape
    l_out = int(math.floor(l_in * scale))
    w = _interp_matrix(l_in, l_out, scale)

    m = n * c
    x2 = x.reshape(m, l_in)                       # contiguous reshape, no copy

    # One row-block when small; 512-row blocks (sublane-aligned) when large.
    tm = m if m <= 512 else 512
    grid = (pl.cdiv(m, tm),)

    out = pl.pallas_call(
        _interp_kernel,
        out_shape=jax.ShapeDtypeStruct((m, l_out), x.dtype),
        grid=grid,
        in_specs=[
            pl.BlockSpec((tm, l_in), lambda i: (i, 0)),
            pl.BlockSpec((l_in, l_out), lambda i: (0, 0)),
        ],
        out_specs=pl.BlockSpec((tm, l_out), lambda i: (i, 0)),
        compiler_params=pltpu.CompilerParams(dimension_semantics=("parallel",)),
    )(x2, w)
    return out.reshape(n, c, l_out)


# ---------------- pure-JAX reference (gather formulation, for correctness) ----------------
def linear_interpolate_ref(x, scale):
    n, c, l_in = x.shape
    l_out = int(math.floor(l_in * scale))
    j = jnp.arange(l_out, dtype=jnp.float32)
    src = jnp.maximum((j + 0.5) / float(scale) - 0.5, 0.0)
    i0 = jnp.clip(jnp.floor(src).astype(jnp.int32), 0, l_in - 1)
    i1 = jnp.minimum(i0 + 1, l_in - 1)
    w1 = src - i0.astype(jnp.float32)
    w0 = 1.0 - w1
    xf = x.astype(jnp.float32)
    out = xf[..., i0] * w0 + xf[..., i1] * w1
    return out.astype(x.dtype)


if __name__ == "__main__":
    # Small shapes consistent with the module: (N, C, L) 3-D input for mode='linear'.
    N, C, L = 2, 4, 16
    stride = 2                                    # module's `scale`

    key = jax.random.PRNGKey(0)
    x = jax.random.normal(key, (N, C, L), jnp.float32)

    out = jax.block_until_ready(linear_interpolate(x, stride))
    ref = jax.block_until_ready(linear_interpolate_ref(x, stride))

    assert out.shape == (N, C, L * stride), out.shape
    assert jnp.max(jnp.abs(out - ref)) < 1e-5, float(jnp.max(jnp.abs(out - ref)))

    print("KERNEL_OK")
</pallas_src>

<mosaic_0001>
module attributes {stable_mosaic.version = 11 : i64} {
  func.func @_interp_kernel(%arg0: i32, %arg1: memref<8x16xf32, #tpu.memory_space<vmem>>, %arg2: memref<16x32xf32, #tpu.memory_space<vmem>>, %arg3: memref<8x32xf32, #tpu.memory_space<vmem>>) attributes {dimension_semantics = [#tpu.dimension_semantics<parallel>], iteration_bounds = array<i64: 1>, scalar_prefetch = 0 : i64, scratch_operands = 0 : i64, tpu.core_type = #tpu.core_type<tc>, window_params = [{transform_indices = @transform_0, window_bounds = array<i64: 8, 16>}, {pipeline_mode = #tpu.pipeline_mode<synchronous>, transform_indices = @transform_1, window_bounds = array<i64: 16, 32>}, {transform_indices = @transform_2, window_bounds = array<i64: 8, 32>}]} {
    %c0 = arith.constant 0 : index
    %c0_0 = arith.constant 0 : index
    %0 = vector.load %arg1[%c0, %c0_0] : memref<8x16xf32, #tpu.memory_space<vmem>>, vector<8x16xf32>
    %c0_1 = arith.constant 0 : index
    %c0_2 = arith.constant 0 : index
    %1 = vector.load %arg2[%c0_1, %c0_2] : memref<16x32xf32, #tpu.memory_space<vmem>>, vector<16x32xf32>
    %cst = arith.constant dense<0.000000e+00> : vector<8x32xf32>
    %2 = tpu.matmul %0, %1, %cst {dimension_numbers = #tpu.dot_dimension_numbers<[1], [0], [0], [1], [0, 0, 1, 1], [], []>} : vector<8x16xf32>, vector<16x32xf32>, vector<8x32xf32> -> vector<8x32xf32>
    %c0_3 = arith.constant 0 : index
    %c0_4 = arith.constant 0 : index
    %3 = vector.load %arg3[%c0_3, %c0_4] : memref<8x32xf32, #tpu.memory_space<vmem>>, vector<8x32xf32>
    tpu.vector_store %arg3[%c0_3, %c0_4], %2 {strides = array<i32>} : memref<8x32xf32, #tpu.memory_space<vmem>>, vector<8x32xf32>,
    return
  }
  func.func @transform_0(%arg0: i32) -> (i32, i32) {
    %c0_i32 = arith.constant 0 : i32
    %c0_i32_0 = arith.constant 0 : i32
    return %arg0, %c0_i32 : i32, i32
  }
  func.func @transform_1(%arg0: i32) -> (i32, i32) {
    %c0_i32 = arith.constant 0 : i32
    %c0_i32_0 = arith.constant 0 : i32
    %c0_i32_1 = arith.constant 0 : i32
    return %c0_i32, %c0_i32_0 : i32, i32
  }
  func.func @transform_2(%arg0: i32) -> (i32, i32) {
    %c0_i32 = arith.constant 0 : i32
    %c0_i32_0 = arith.constant 0 : i32
    return %arg0, %c0_i32 : i32, i32
  }
}

</mosaic_0001>

<bundles_post_ra>
// kernel: tpu_custom_call.1
= control target key start
LH: loop header
LB: loop body
LE: loop exit
PB: predicated region body
PF: predicated region fallthrough
CT: control target
= control target key end

     0   :  { %7 = vsyncpa [#allocation3], 0  ;;  %s293_s0 = inlined_call_operand.hbm [shape: f32[8,16], index: 0, kind: input, shape index: {}]   ;;  %s294_s1 = inlined_call_operand.hbm [shape: f32[16,32], index: 1, kind: input, shape index: {}]   ;;  %s295_s2 = inlined_call_operand.hbm [shape: f32[8,32], index: 2, kind: output, shape index: {}]  }
   0x1   :  { %8 = vsyncpa [#allocation6], 0 }
   0x2   :  { %9 = vsyncpa [#allocation4], 0  ;;  %s227_s9 = smov [#allocation2]   ;;  %s228_s11 = smov [#allocation5]  }
   0x3   :  { %s16_s10 = sshll.u32 %s227_s9, 4  ;;  %s25_s12 = sshll.u32 %s228_s11, 4  ;;  %s17_s10 = int_to_ptr.vmem [resolvable:$true] %s16_s10  ;;  %s250_s12 = int_to_ptr.vmem [resolvable:$true] %s25_s12 }
   0x4   :  { %s155_s15 = scalar_lea.hbm %s293_s0, 128 }
   0x5   :  { %p156_p0 = scmp.ne.s32.totalorder %s293_s0, %s155_s15  ;;  %p159_p1 = scmp.lt.u32.totalorder %s155_s15, %s293_s0 }
   0x7   :  { %p161_p2 = pnand %p159_p1, %p156_p0 }
   0x9   :  { %164 = shalt.err (!%p161_p2)
}
   0xa   :  { %s165_s20 = scalar_lea.vmem %s17_s10, 128  ;;  %p170_p4 = scmp.lt.s32.totalorder %s17_s10, %s17_s10 }
   0xb   :  { %p166_p3 = scmp.ne.s32.totalorder %s17_s10, %s165_s20  ;;  %p171_p5 = scmp.lt.s32.totalorder %s165_s20, %s165_s20 }
   0xd   :  { %p172_p6 = por %p171_p5, %p170_p4 }
   0xf   :  { %p173_p7 = pnand %p172_p6, %p166_p3 }
  0x11   :  { %176 = shalt.err (!%p173_p7)
}
  0x12   :  { %19 = dma.hbm_to_vmem [thread:$0]  %s293_s0, 128, %s17_s10, [#allocation3]  }
  0x13   :  { %s177_s25 = scalar_lea.hbm %s294_s1, 256 }
  0x14   :  { %p178_p8 = scmp.ne.s32.totalorder %s294_s1, %s177_s25  ;;  %p181_p9 = scmp.lt.u32.totalorder %s177_s25, %s294_s1 }
  0x16   :  { %p183_p10 = pnand %p181_p9, %p178_p8 }
  0x18   :  { %186 = shalt.err (!%p183_p10)
}
  0x19   :  { %s187_s30 = scalar_lea.vmem %s250_s12, 256  ;;  %p192_p12 = scmp.lt.s32.totalorder %s250_s12, %s250_s12 }
  0x1a   :  { %p188_p11 = scmp.ne.s32.totalorder %s250_s12, %s187_s30  ;;  %p193_p13 = scmp.lt.s32.totalorder %s187_s30, %s187_s30 }
  0x1c   :  { %p194_p0 = por %p193_p13, %p192_p12 }
  0x1e   :  { %p195_p1 = pnand %p194_p0, %p188_p11 }
  0x20   :  { %198 = shalt.err (!%p195_p1)
}
  0x21   :  { %s229_s0 = smov 128   ;;  %s230_s3 = smov 8  }
  0x22   :  { %31 = dma.hbm_to_vmem [thread:$0]  %s294_s1, 256, %s250_s12, [#allocation6], %s229_s0, %s229_s0, %s230_s3  }
  0x23   :  { %221 = dma.done.wait [#allocation3], 128  }
  0x24   :  { %222 = vsyncadd [#allocation3], 4294967168 }
  0x25   :  { %223 = dma.done.wait [#allocation6], 256  }
  0x26   :  { %224 = vsyncadd [#allocation6], 4294967040  ;;  %v231_v0 = vmov 0.0|0.0   ;;  %vm232_vm0 = vmmov 0   ;;  %v233_v1 = vmov 0.0   ;;  %v39_v2 = vld [vmem:[#allocation5] sm:$0xff] }
  0x27   :  { %144 = vmatprep.subr.bf16.mxu0 %v231_v0  ;;  %141 = vmatprep.mubr.msk.f32.mxu0 %vm232_vm0, %v233_v1  ;;  %v40_v3 = vld [vmem:[#allocation5 + $0x8] sm:$0xff]  ;;  %v38_v5 = vld [vmem:[#allocation2] sm:$0xff]  ;;  %vm41_vm1 = vcmask 130048   ;;  %s234_s6 = smov [#allocation7]   ;;  %vm115_vm2 = vcmask 261120  }
  0x28   :  { %v145_v4 = vpack.c.bf16 %v40_v3, %v39_v2  ;;  %s123_s7 = sshll.u32 %s234_s6, 4  ;;  %s124_s7 = int_to_ptr.vmem [resolvable:$true] %s123_s7 }
  0x29   :  { %s199_s1 = scalar_lea.vmem %s124_s7, 128  ;;  %p204_p3 = scmp.lt.s32.totalorder %s124_s7, %s124_s7 }
  0x2a   :  { %146 = vmatpush3.bf16.msra.mxu0 %v145_v4  ;;  %p200_p2 = scmp.ne.s32.totalorder %s124_s7, %s199_s1  ;;  %p205_p4 = scmp.lt.s32.totalorder %s199_s1, %s199_s1 }
  0x2c   :  { %p206_p5 = por %p205_p4, %p204_p3 }
  0x2d   :  { %142 = vmatmul.mubr.msk.f32.vlgmr.msra.gmra.mrb[0].mxu0 %vm41_vm1, %v38_v5 }
  0x2e   :  { %p207_p6 = pnand %p206_p5, %p200_p2 }
 0x100   :  { %v111_v6 = vpop.f32.mrb[0].mxu0 }
 0x101   :  { %v143_v7 = vpop.f32.mrb[1].mxu0  ;;  %116 = vst.msk [vmem:[#allocation7] sm:$0xff] %vm115_vm2, %v111_v6 }
 0x102   :  { %210 = shalt.err (!%p207_p6)
}
 0x103   :  { %s211_s10 = scalar_lea.hbm %s295_s2, 128 }
 0x104   :  { %p212_p7 = scmp.ne.s32.totalorder %s295_s2, %s211_s10  ;;  %p215_p8 = scmp.lt.u32.totalorder %s211_s10, %s295_s2 }
 0x106   :  { %p217_p9 = pnand %p215_p8, %p212_p7 }
 0x108   :  { %220 = shalt.err (!%p217_p9)
}
 0x109   :  { %126 = dma.vmem_to_hbm [thread:$0]  %s124_s7, 128, %s295_s2, [#allocation4]  }
 0x10a   :  { %225 = dma.done.wait [#allocation4], 128  }
 0x10b   :  { %226 = vsyncadd [#allocation4], 4294967168 }
 0x10c   :  { %130 = vsyncpa [#allocation3], 1 }
 0x10d   :  { %131 = vsyncpa [#allocation6], 1 }
 0x10e   :  { %132 = vsyncpa [#allocation4], 1 }

</bundles_post_ra>
